<compile_context>
chip_gen: v7x
topology: tpu7x:2x2x1
jax: 0.10.0
libtpu: 0.0.40
codegen_flags: <defaults>
</compile_context>

<pallas_src>
import functools
import math

import jax
import jax.numpy as jnp
from jax.experimental import pallas as pl
from jax.experimental.pallas import tpu as pltpu


def _span_ds(start, size, stride):
    """Dynamic (possibly strided) window for ref indexing."""
    if stride == 1:
        return pl.ds(start, size)
    return pl.ds(start, size, stride)


# ---------------------------------------------------------------------------
# Kernel: fused im2col GEMM convolution.
# One grid step = `Nb` batch elements x `rows_tile` output rows; the full
# KH*KW*C_in contraction is done in a single MXU matmul (no tap loop /
# accumulator chain), with bias + ReLU fused into the epilogue.
# ---------------------------------------------------------------------------
def _conv_im2col_kernel(x_ref, w_ref, b_ref, o_ref, *,
                        Nb, rows_tile, W_out, C_in, C_out, KH, KW,
                        stride, dilation, has_bias, apply_relu,
                        mxu_dtype, lane_dense_out):
    # x_ref : (Nb, H_pad, W_pad, C_in)      padded NHWC input (whole image)
    # w_ref : (KH*KW*C_in, C_out)           flattened HWIO weights (mxu_dtype)
    # b_ref : (1, C_out)                    bias (zeros when has_bias=False)
    # o_ref : (Nb, rows_tile, W_out*C_out)  lane-dense output tile
    #         or (Nb, rows_tile, W_out, C_out) when lane_dense_out=False
    j = pl.program_id(1)
    r0 = pl.multiple_of(j * (rows_tile * stride), rows_tile * stride)

    m = Nb * rows_tile * W_out
    taps = []
    for kh in range(KH):          # static Python loops -> fully unrolled
        for kw in range(KW):
            patch = x_ref[:, _span_ds(r0 + kh * dilation, rows_tile, stride),
                          _span_ds(kw * dilation, W_out, stride), :]
            taps.append(patch.reshape(m, C_in))
    # Contraction order (kh, kw, c_in) matches the HWIO weight flattening.
    lhs = taps[0] if len(taps) == 1 else jnp.concatenate(taps, axis=-1)

    acc = jnp.dot(lhs.astype(mxu_dtype), w_ref[...],
                  preferred_element_type=jnp.float32)
    if has_bias:
        acc = acc + b_ref[0].astype(jnp.float32)[None, :]
    if apply_relu:
        acc = jnp.maximum(acc, 0.0)

    if lane_dense_out:
        o_ref[...] = acc.reshape(Nb, rows_tile, W_out * C_out).astype(o_ref.dtype)
    else:
        o_ref[...] = acc.reshape(Nb, rows_tile, W_out, C_out).astype(o_ref.dtype)


# ---------------------------------------------------------------------------
# Tiling heuristics
# ---------------------------------------------------------------------------
_IN_BLOCK_BUDGET = 16 * 1024 * 1024   # double-buffered input block budget
_TILE_BUDGET = 8 * 1024 * 1024        # per-step GEMM intermediate budget
_MIN_VMEM = 32 * 1024 * 1024
_MAX_VMEM = 64 * 1024 * 1024          # v7x physical VMEM per core


def _largest_batch_block(N, per_batch_bytes):
    nb = N
    while nb > 1 and 2 * nb * per_batch_bytes > _IN_BLOCK_BUDGET:
        nb -= 1
        while N % nb:
            nb -= 1
    return nb


def _largest_row_tile(H_out, cost_fn):
    if cost_fn(H_out) <= _TILE_BUDGET:
        return H_out
    best = None
    for rt in range(8, H_out, 8):          # multiple of 8 rows (sublane rule)
        if H_out % rt == 0 and cost_fn(rt) <= _TILE_BUDGET:
            best = rt
    return best if best is not None else H_out


# ---------------------------------------------------------------------------
# Wrapper: NHWC conv2d == torch.nn.Conv2d forward (+ optional fused ReLU)
# ---------------------------------------------------------------------------
def conv2d_nhwc(x_nhwc, w_hwio, bias=None, *, stride=1, padding=0, dilation=1,
                relu=False, mxu_dtype=jnp.bfloat16):
    N, H, W, C_in = x_nhwc.shape
    KH, KW, C_in_w, C_out = w_hwio.shape
    assert C_in == C_in_w

    H_out = (H + 2 * padding - dilation * (KH - 1) - 1) // stride + 1
    W_out = (W + 2 * padding - dilation * (KW - 1) - 1) // stride + 1
    H_pad, W_pad = H + 2 * padding, W + 2 * padding
    K_flat = KH * KW * C_in

    x_pad = jnp.pad(x_nhwc, ((0, 0), (padding, padding),
                             (padding, padding), (0, 0)))
    w_flat = w_hwio.reshape(K_flat, C_out).astype(mxu_dtype)
    has_bias = bias is not None
    b2d = (bias if has_bias else jnp.zeros((C_out,), jnp.float32))
    b2d = b2d.astype(jnp.float32).reshape(1, C_out)

    itemsize = x_pad.dtype.itemsize
    mxu_size = jnp.dtype(mxu_dtype).itemsize
    per_batch_in = H_pad * W_pad * C_in * itemsize
    Nb = _largest_batch_block(N, per_batch_in)

    def tile_cost(rt):      # per-grid-step GEMM intermediates + output block
        m = Nb * rt * W_out
        return (m * K_flat * (itemsize + mxu_size) + m * C_out * 4
                + 2 * Nb * rt * W_out * C_out * itemsize)

    rows_tile = _largest_row_tile(H_out, tile_cost)
    grid = (N // Nb, H_out // rows_tile)

    vmem_est = (2 * Nb * per_batch_in
                + 2 * Nb * rows_tile * W_out * C_out * itemsize
                + K_flat * C_out * mxu_size + C_out * 4
                + tile_cost(rows_tile))
    vmem_limit = int(min(_MAX_VMEM, max(_MIN_VMEM, 2 * vmem_est)))

    def build(lane_dense):
        kernel = functools.partial(
            _conv_im2col_kernel,
            Nb=Nb, rows_tile=rows_tile, W_out=W_out, C_in=C_in, C_out=C_out,
            KH=KH, KW=KW, stride=stride, dilation=dilation,
            has_bias=has_bias, apply_relu=relu, mxu_dtype=mxu_dtype,
            lane_dense_out=lane_dense)
        if lane_dense:
            out_shape = jax.ShapeDtypeStruct((N, H_out, W_out * C_out),
                                             x_nhwc.dtype)
            out_spec = pl.BlockSpec((Nb, rows_tile, W_out * C_out),
                                    lambda n, j: (n, j, 0))
        else:
            out_shape = jax.ShapeDtypeStruct((N, H_out, W_out, C_out),
                                             x_nhwc.dtype)
            out_spec = pl.BlockSpec((Nb, rows_tile, W_out, C_out),
                                    lambda n, j: (n, j, 0, 0))
        return pl.pallas_call(
            kernel,
            out_shape=out_shape,
            grid_spec=pltpu.PrefetchScalarGridSpec(
                num_scalar_prefetch=0,
                grid=grid,
                in_specs=[
                    pl.BlockSpec((Nb, H_pad, W_pad, C_in),
                                 lambda n, j: (n, 0, 0, 0)),
                    pl.BlockSpec((K_flat, C_out), lambda n, j: (0, 0)),
                    pl.BlockSpec((1, C_out), lambda n, j: (0, 0)),
                ],
                out_specs=out_spec),
            compiler_params=pltpu.CompilerParams(
                dimension_semantics=("parallel", "parallel"),
                vmem_limit_bytes=vmem_limit),
        )

    try:
        out = jax.block_until_ready(build(True)(x_pad, w_flat, b2d))
        return out.reshape(N, H_out, W_out, C_out)
    except Exception:
        # Fallback layout if the lane-dense epilogue reshape fails to lower.
        return build(False)(x_pad, w_flat, b2d)


def _oihw_to_hwio(w):
    return jnp.transpose(w, (2, 3, 1, 0))


# ---------------------------------------------------------------------------
# Demo / self-check on the Encoder_Level conv flavors
# ---------------------------------------------------------------------------
if __name__ == "__main__":
    key = jax.random.PRNGKey(0)
    N, H, W = 2, 16, 16
    feature_num = 8
    init_ch = math.ceil(feature_num / 2)      # GhostBlock ratio=2
    d = 2                                     # middle entry of rdb d_list=(1,2,1)

    kx, k1, k2, k3, kb = jax.random.split(key, 5)
    x_nchw = jax.random.normal(kx, (N, feature_num, H, W), dtype=jnp.float32)

    def _uinit(k, shape, fan_in):
        bound = (1.0 / fan_in) ** 0.5
        return jax.random.uniform(k, shape, jnp.float32, -bound, bound)

    # GhostBlock(inp=feature_num, oup=feature_num): 1x1 primary conv and
    # dilated 3x3 "cheap" conv (bias=False, ReLU), then channel concat.
    w_primary = _uinit(k1, (init_ch, feature_num, 1, 1), feature_num)
    w_cheap = _uinit(k2, (init_ch, init_ch, 3, 3), init_ch * 9)
    # Encoder_Level.down: Conv2d(f, 2f, 3, stride=2, padding=1, bias=True)+ReLU
    w_down = _uinit(k3, (2 * feature_num, feature_num, 3, 3), feature_num * 9)
    b_down = _uinit(kb, (2 * feature_num,), feature_num * 9)

    # ---- Pallas forward: stays NHWC between convs, fused bias+ReLU ----
    x_nhwc = jnp.transpose(x_nchw, (0, 2, 3, 1))
    x1 = conv2d_nhwc(x_nhwc, _oihw_to_hwio(w_primary), None,
                     stride=1, padding=0, dilation=1, relu=True)
    x2 = conv2d_nhwc(x1, _oihw_to_hwio(w_cheap), None,
                     stride=1, padding=d, dilation=d, relu=True)
    ghost = jnp.concatenate([x1, x2], axis=-1)[..., :feature_num]
    down = conv2d_nhwc(ghost, _oihw_to_hwio(w_down), b_down,
                       stride=2, padding=1, dilation=1, relu=True)
    out_nchw = jax.block_until_ready(jnp.transpose(down, (0, 3, 1, 2)))
    # TODO(synk): the remaining Encoder_Level wiring (GhostModule/SAM channel
    # concats, bilinear F.interpolate, ECA pooling / 1-D convs / channel
    # shuffle / sigmoid gating, residual adds) is elementwise / data-movement
    # glue composed around this conv kernel and is not re-implemented here.

    # ---- references ----
    def ref_conv(x, w_hwio, b, s, p, dil, relu_, op_dtype):
        y = jax.lax.conv_general_dilated(
            x.astype(op_dtype), w_hwio.astype(op_dtype),
            window_strides=(s, s), padding=((p, p), (p, p)),
            rhs_dilation=(dil, dil),
            dimension_numbers=("NHWC", "HWIO", "NHWC"),
            preferred_element_type=jnp.float32)
        if b is not None:
            y = y + b.reshape(1, 1, 1, -1).astype(jnp.float32)
        if relu_:
            y = jnp.maximum(y, 0.0)
        return y.astype(x.dtype)

    # Per-layer check: identical inputs, same bf16-operand/f32-accumulate math.
    r1 = ref_conv(x_nhwc, _oihw_to_hwio(w_primary), None, 1, 0, 1, True, jnp.bfloat16)
    r2 = ref_conv(x1, _oihw_to_hwio(w_cheap), None, 1, d, d, True, jnp.bfloat16)
    r3 = ref_conv(ghost, _oihw_to_hwio(w_down), b_down, 2, 1, 1, True, jnp.bfloat16)
    assert jnp.allclose(x1, r1, atol=1e-3, rtol=1e-3)
    assert jnp.allclose(x2, r2, atol=1e-3, rtol=1e-3)
    assert jnp.allclose(down, r3, atol=1e-3, rtol=1e-3)

    # End-to-end check against a pure-f32 pipeline (loose: bf16 MXU operands).
    f1 = ref_conv(x_nhwc, _oihw_to_hwio(w_primary), None, 1, 0, 1, True, jnp.float32)
    f2 = ref_conv(f1, _oihw_to_hwio(w_cheap), None, 1, d, d, True, jnp.float32)
    fg = jnp.concatenate([f1, f2], axis=-1)[..., :feature_num]
    f3 = ref_conv(fg, _oihw_to_hwio(w_down), b_down, 2, 1, 1, True, jnp.float32)
    ref_nchw = jnp.transpose(f3, (0, 3, 1, 2))
    assert out_nchw.shape == ref_nchw.shape == (N, 2 * feature_num, H // 2, W // 2)
    assert jnp.allclose(out_nchw, ref_nchw, atol=1e-1, rtol=1e-1)

    print("KERNEL_OK")
</pallas_src>

<mosaic_0001>
module attributes {stable_mosaic.version = 11 : i64} {
  func.func @_conv_im2col_kernel(%arg0: i32, %arg1: i32, %arg2: memref<2x16x16x8xf32, #tpu.memory_space<vmem>>, %arg3: memref<8x4xbf16, #tpu.memory_space<vmem>>, %arg4: memref<1x4xf32, #tpu.memory_space<vmem>>, %arg5: memref<2x16x64xf32, #tpu.memory_space<vmem>>) attributes {dimension_semantics = [#tpu.dimension_semantics<parallel>, #tpu.dimension_semantics<parallel>], iteration_bounds = array<i64: 1, 1>, scalar_prefetch = 0 : i64, scratch_operands = 0 : i64, tpu.core_type = #tpu.core_type<tc>, window_params = [{transform_indices = @transform_0, window_bounds = array<i64: 2, 16, 16, 8>}, {pipeline_mode = #tpu.pipeline_mode<synchronous>, transform_indices = @transform_1, window_bounds = array<i64: 8, 4>}, {pipeline_mode = #tpu.pipeline_mode<synchronous>, transform_indices = @transform_2, window_bounds = array<i64: 1, 4>}, {transform_indices = @transform_3, window_bounds = array<i64: 2, 16, 64>}]} {
    %c16_i32 = arith.constant 16 : i32
    %0 = arith.muli %arg1, %c16_i32 : i32
    %1 = tpu.assume_multiple %0, 16 : i32
    %c0_i32 = arith.constant 0 : i32
    %2 = arith.addi %1, %c0_i32 : i32
    %c0 = arith.constant 0 : index
    %3 = arith.index_cast %2 : i32 to index
    %c0_0 = arith.constant 0 : index
    %c0_1 = arith.constant 0 : index
    %4 = vector.load %arg2[%c0, %3, %c0_0, %c0_1] : memref<2x16x16x8xf32, #tpu.memory_space<vmem>>, vector<2x16x16x8xf32>
    %5 = vector.shape_cast %4 : vector<2x16x16x8xf32> to vector<512x8xf32>
    %6 = arith.truncf %5 : vector<512x8xf32> to vector<512x8xbf16>
    %c0_2 = arith.constant 0 : index
    %c0_3 = arith.constant 0 : index
    %7 = vector.load %arg3[%c0_2, %c0_3] : memref<8x4xbf16, #tpu.memory_space<vmem>>, vector<8x4xbf16>
    %cst = arith.constant dense<0.000000e+00> : vector<512x4xf32>
    %8 = tpu.matmul %6, %7, %cst {dimension_numbers = #tpu.dot_dimension_numbers<[1], [0], [0], [1], [0, 0, 1, 1], [], []>} : vector<512x8xbf16>, vector<8x4xbf16>, vector<512x4xf32> -> vector<512x4xf32>
    %cst_4 = arith.constant 0.000000e+00 : f32
    %9 = vector.broadcast %cst_4 : f32 to vector<512x4xf32>
    %10 = arith.maximumf %8, %9 : vector<512x4xf32>
    %11 = vector.shape_cast %10 : vector<512x4xf32> to vector<2x16x64xf32>
    %c0_5 = arith.constant 0 : index
    %c0_6 = arith.constant 0 : index
    %c0_7 = arith.constant 0 : index
    %12 = vector.load %arg5[%c0_5, %c0_6, %c0_7] : memref<2x16x64xf32, #tpu.memory_space<vmem>>, vector<2x16x64xf32>
    tpu.vector_store %arg5[%c0_5, %c0_6, %c0_7], %11 {strides = array<i32>} : memref<2x16x64xf32, #tpu.memory_space<vmem>>, vector<2x16x64xf32>,
    return
  }
  func.func @transform_0(%arg0: i32, %arg1: i32) -> (i32, i32, i32, i32) {
    %c0_i32 = arith.constant 0 : i32
    %c0_i32_0 = arith.constant 0 : i32
    %c0_i32_1 = arith.constant 0 : i32
    %c0_i32_2 = arith.constant 0 : i32
    return %arg0, %c0_i32, %c0_i32_0, %c0_i32_1 : i32, i32, i32, i32
  }
  func.func @transform_1(%arg0: i32, %arg1: i32) -> (i32, i32) {
    %c0_i32 = arith.constant 0 : i32
    %c0_i32_0 = arith.constant 0 : i32
    %c0_i32_1 = arith.constant 0 : i32
    return %c0_i32, %c0_i32_0 : i32, i32
  }
  func.func @transform_2(%arg0: i32, %arg1: i32) -> (i32, i32) {
    %c0_i32 = arith.constant 0 : i32
    %c0_i32_0 = arith.constant 0 : i32
    %c0_i32_1 = arith.constant 0 : i32
    return %c0_i32, %c0_i32_0 : i32, i32
  }
  func.func @transform_3(%arg0: i32, %arg1: i32) -> (i32, i32, i32) {
    %c0_i32 = arith.constant 0 : i32
    %c0_i32_0 = arith.constant 0 : i32
    return %arg0, %arg1, %c0_i32 : i32, i32, i32
  }
}

module attributes {stable_mosaic.version = 11 : i64} {
  func.func @_conv_im2col_kernel(%arg0: i32, %arg1: i32, %arg2: memref<2x16x16x8xf32, #tpu.memory_space<vmem>>, %arg3: memref<8x4xbf16, #tpu.memory_space<vmem>>, %arg4: memref<1x4xf32, #tpu.memory_space<vmem>>, %arg5: memref<2x16x16x4xf32, #tpu.memory_space<vmem>>) attributes {dimension_semantics = [#tpu.dimension_semantics<parallel>, #tpu.dimension_semantics<parallel>], iteration_bounds = array<i64: 1, 1>, scalar_prefetch = 0 : i64, scratch_operands = 0 : i64, tpu.core_type = #tpu.core_type<tc>, window_params = [{transform_indices = @transform_0, window_bounds = array<i64: 2, 16, 16, 8>}, {pipeline_mode = #tpu.pipeline_mode<synchronous>, transform_indices = @transform_1, window_bounds = array<i64: 8, 4>}, {pipeline_mode = #tpu.pipeline_mode<synchronous>, transform_indices = @transform_2, window_bounds = array<i64: 1, 4>}, {transform_indices = @transform_3, window_bounds = array<i64: 2, 16, 16, 4>}]} {
    %c16_i32 = arith.constant 16 : i32
    %0 = arith.muli %arg1, %c16_i32 : i32
    %1 = tpu.assume_multiple %0, 16 : i32
    %c0_i32 = arith.constant 0 : i32
    %2 = arith.addi %1, %c0_i32 : i32
    %c0 = arith.constant 0 : index
    %3 = arith.index_cast %2 : i32 to index
    %c0_0 = arith.constant 0 : index
    %c0_1 = arith.constant 0 : index
    %4 = vector.load %arg2[%c0, %3, %c0_0, %c0_1] : memref<2x16x16x8xf32, #tpu.memory_space<vmem>>, vector<2x16x16x8xf32>
    %5 = vector.shape_cast %4 : vector<2x16x16x8xf32> to vector<512x8xf32>
    %6 = arith.truncf %5 : vector<512x8xf32> to vector<512x8xbf16>
    %c0_2 = arith.constant 0 : index
    %c0_3 = arith.constant 0 : index
    %7 = vector.load %arg3[%c0_2, %c0_3] : memref<8x4xbf16, #tpu.memory_space<vmem>>, vector<8x4xbf16>
    %cst = arith.constant dense<0.000000e+00> : vector<512x4xf32>
    %8 = tpu.matmul %6, %7, %cst {dimension_numbers = #tpu.dot_dimension_numbers<[1], [0], [0], [1], [0, 0, 1, 1], [], []>} : vector<512x8xbf16>, vector<8x4xbf16>, vector<512x4xf32> -> vector<512x4xf32>
    %cst_4 = arith.constant 0.000000e+00 : f32
    %9 = vector.broadcast %cst_4 : f32 to vector<512x4xf32>
    %10 = arith.maximumf %8, %9 : vector<512x4xf32>
    %11 = vector.shape_cast %10 : vector<512x4xf32> to vector<2x16x16x4xf32>
    %c0_5 = arith.constant 0 : index
    %c0_6 = arith.constant 0 : index
    %c0_7 = arith.constant 0 : index
    %c0_8 = arith.constant 0 : index
    %12 = vector.load %arg5[%c0_5, %c0_6, %c0_7, %c0_8] : memref<2x16x16x4xf32, #tpu.memory_space<vmem>>, vector<2x16x16x4xf32>
    tpu.vector_store %arg5[%c0_5, %c0_6, %c0_7, %c0_8], %11 {strides = array<i32>} : memref<2x16x16x4xf32, #tpu.memory_space<vmem>>, vector<2x16x16x4xf32>,
    return
  }
  func.func @transform_0(%arg0: i32, %arg1: i32) -> (i32, i32, i32, i32) {
    %c0_i32 = arith.constant 0 : i32
    %c0_i32_0 = arith.constant 0 : i32
    %c0_i32_1 = arith.constant 0 : i32
    %c0_i32_2 = arith.constant 0 : i32
    return %arg0, %c0_i32, %c0_i32_0, %c0_i32_1 : i32, i32, i32, i32
  }
  func.func @transform_1(%arg0: i32, %arg1: i32) -> (i32, i32) {
    %c0_i32 = arith.constant 0 : i32
    %c0_i32_0 = arith.constant 0 : i32
    %c0_i32_1 = arith.constant 0 : i32
    return %c0_i32, %c0_i32_0 : i32, i32
  }
  func.func @transform_2(%arg0: i32, %arg1: i32) -> (i32, i32) {
    %c0_i32 = arith.constant 0 : i32
    %c0_i32_0 = arith.constant 0 : i32
    %c0_i32_1 = arith.constant 0 : i32
    return %c0_i32, %c0_i32_0 : i32, i32
  }
  func.func @transform_3(%arg0: i32, %arg1: i32) -> (i32, i32, i32, i32) {
    %c0_i32 = arith.constant 0 : i32
    %c0_i32_0 = arith.constant 0 : i32
    %c0_i32_1 = arith.constant 0 : i32
    return %arg0, %arg1, %c0_i32, %c0_i32_0 : i32, i32, i32, i32
  }
}

</mosaic_0001>

<bundles_post_ra>
// kernel: tpu_custom_call.1
= control target key start
LH: loop header
LB: loop body
LE: loop exit
PB: predicated region body
PF: predicated region fallthrough
CT: control target
= control target key end

     0   :  { %vm212_vm0 = vcmask 1043456   ;;  %vm115_vm1 = vcmask 64512   ;;  %vm569_vm2 = vcmask 31744   ;;  %s1276_s1 = inlined_call_operand.vmem [shape: bf16[8,4], index: 1, kind: input, shape index: {}]   ;;  %s1277_s2 = inlined_call_operand.vmem [shape: f32[1,4], index: 2, kind: input, shape index: {}]   ;;  %s1278_s0 = inlined_call_operand.vmem [shape: f32[2,16,16,8], index: 0, kind: input, shape index: {}]   ;;  %s1279_s3 = inlined_call_operand.vmem [shape: f32[2,16,16,4], index: 3, kind: output, shape index: {}]  }
   0x1   :  { %v114_v0 = vld [vmem:[%s1276_s1] sm:$0xf]  ;;  %v19_v2 = vld [vmem:[%s1278_s0 + $0x8] sm:$0xff]  ;;  %v20_v7 = vld [vmem:[%s1278_s0 + $0x10] sm:$0xff] }
   0x2   :  { %v18_v1 = vld [vmem:[%s1278_s0] sm:$0xff]  ;;  %771 = vmatprep.subr.msk.bf16.mxu0 %vm212_vm0, %v114_v0  ;;  %772 = vmatprep.subr.msk.bf16.mxu1 %vm212_vm0, %v114_v0  ;;  %v214_v3 = vsel %vm212_vm0, %v114_v0, 0  ;;  %v51_v6 = vld [vmem:[%s1278_s0 + $0x108] sm:$0xff]  ;;  %v21_v9 = vld [vmem:[%s1278_s0 + $0x18] sm:$0xff] }
   0x3   :  { %v82_v4 = vpack.c.bf16 %v19_v2, %v18_v1  ;;  %v50_v5 = vld [vmem:[%s1278_s0 + $0x100] sm:$0xff]  ;;  %704 = vmatpush3.bf16.msra.mxu0 %v214_v3  ;;  %770 = vmatpush3.bf16.msra.mxu1 %v214_v3  ;;  %v52_v10 = vld [vmem:[%s1278_s0 + $0x110] sm:$0xff]  ;;  %v53_v11 = vld [vmem:[%s1278_s0 + $0x118] sm:$0xff]  ;;  %v83_v12 = vpack.c.bf16 %v21_v9, %v20_v7 }
   0x4   :  { %v98_v8 = vpack.c.bf16 %v51_v6, %v50_v5  ;;  %v99_v13 = vpack.c.bf16 %v53_v11, %v52_v10  ;;  %v22_v14 = vld [vmem:[%s1278_s0 + $0x20] sm:$0xff]  ;;  %v23_v15 = vld [vmem:[%s1278_s0 + $0x28] sm:$0xff]  ;;  %v24_v20 = vld [vmem:[%s1278_s0 + $0x30] sm:$0xff] }
   0x5   :  { %705 = vmatprep.mubr.msk.bf16.mxu0 %vm115_vm1, %v82_v4  ;;  %v54_v16 = vld [vmem:[%s1278_s0 + $0x120] sm:$0xff]  ;;  %v84_v17 = vpack.c.bf16 %v23_v15, %v22_v14  ;;  %v55_v18 = vld [vmem:[%s1278_s0 + $0x128] sm:$0xff]  ;;  %v25_v21 = vld [vmem:[%s1278_s0 + $0x38] sm:$0xff] }
   0x6   :  { %737 = vmatprep.mubr.msk.bf16.mxu1 %vm115_vm1, %v98_v8  ;;  %706 = vmatmul.mubr.msk.bf16.vlgmr.msra.gmra.mrb[0].mxu0 %vm115_vm1, %v83_v12  ;;  %v100_v19 = vpack.c.bf16 %v55_v18, %v54_v16  ;;  %v56_v22 = vld [vmem:[%s1278_s0 + $0x130] sm:$0xff]  ;;  %v57_v23 = vld [vmem:[%s1278_s0 + $0x138] sm:$0xff]  ;;  %v26_v24 = vld [vmem:[%s1278_s0 + $0x40] sm:$0xff]  ;;  %v85_v28 = vpack.c.bf16 %v25_v21, %v24_v20 }
   0x7   :  { %738 = vmatmul.mubr.msk.bf16.vlgmr.msra.gmra.mrb[0].mxu1 %vm115_vm1, %v99_v13  ;;  %709 = vmatprep.mubr.msk.bf16.mxu0 %vm115_vm1, %v84_v17  ;;  %v27_v25 = vld [vmem:[%s1278_s0 + $0x48] sm:$0xff]  ;;  %v58_v26 = vld [vmem:[%s1278_s0 + $0x140] sm:$0xff]  ;;  %v101_v29 = vpack.c.bf16 %v57_v23, %v56_v22  ;;  %v28_v32 = vld [vmem:[%s1278_s0 + $0x50] sm:$0xff] }
   0x8   :  { %741 = vmatprep.mubr.msk.bf16.mxu1 %vm115_vm1, %v100_v19  ;;  %v59_v27 = vld [vmem:[%s1278_s0 + $0x148] sm:$0xff]  ;;  %v86_v30 = vpack.c.bf16 %v27_v25, %v26_v24  ;;  %v29_v33 = vld [vmem:[%s1278_s0 + $0x58] sm:$0xff]  ;;  %v60_v34 = vld [vmem:[%s1278_s0 + $0x150] sm:$0xff] }
   0x9   :  { %v102_v31 = vpack.c.bf16 %v59_v27, %v58_v26  ;;  %v61_v35 = vld [vmem:[%s1278_s0 + $0x158] sm:$0xff]  ;;  %v30_v36 = vld [vmem:[%s1278_s0 + $0x60] sm:$0xff]  ;;  %v31_v37 = vld [vmem:[%s1278_s0 + $0x68] sm:$0xff]  ;;  %v87_v40 = vpack.c.bf16 %v29_v33, %v28_v32 }
   0xa   :  { %v62_v38 = vld [vmem:[%s1278_s0 + $0x160] sm:$0xff]  ;;  %v63_v39 = vld [vmem:[%s1278_s0 + $0x168] sm:$0xff]  ;;  %v103_v41 = vpack.c.bf16 %v61_v35, %v60_v34  ;;  %v88_v42 = vpack.c.bf16 %v31_v37, %v30_v36  ;;  %v32_v44 = vld [vmem:[%s1278_s0 + $0x70] sm:$0xff] }
   0xb   :  { %v104_v43 = vpack.c.bf16 %v63_v39, %v62_v38  ;;  %v33_v45 = vld [vmem:[%s1278_s0 + $0x78] sm:$0xff]  ;;  %v64_v46 = vld [vmem:[%s1278_s0 + $0x170] sm:$0xff]  ;;  %v34_v48 = vld [vmem:[%s1278_s0 + $0x80] sm:$0xff] }
   0xc   :  { %v65_v47 = vld [vmem:[%s1278_s0 + $0x178] sm:$0xff]  ;;  %v35_v49 = vld [vmem:[%s1278_s0 + $0x88] sm:$0xff]  ;;  %v66_v50 = vld [vmem:[%s1278_s0 + $0x180] sm:$0xff]  ;;  %v89_v52 = vpack.c.bf16 %v33_v45, %v32_v44 }
   0xd   :  { %v67_v51 = vld [vmem:[%s1278_s0 + $0x188] sm:$0xff]  ;;  %v105_v53 = vpack.c.bf16 %v65_v47, %v64_v46  ;;  %v90_v54 = vpack.c.bf16 %v35_v49, %v34_v48  ;;  %v36_v56 = vld [vmem:[%s1278_s0 + $0x90] sm:$0xff]  ;;  %v37_v57 = vld [vmem:[%s1278_s0 + $0x98] sm:$0xff] }
   0xe   :  { %710 = vmatmul.mubr.msk.bf16.gmra.mrb[4].mxu0 %vm115_vm1, %v85_v28  ;;  %v106_v55 = vpack.c.bf16 %v67_v51, %v66_v50  ;;  %v68_v58 = vld [vmem:[%s1278_s0 + $0x190] sm:$0xff]  ;;  %v69_v59 = vld [vmem:[%s1278_s0 + $0x198] sm:$0xff]  ;;  %v38_v60 = vld [vmem:[%s1278_s0 + $0xa0] sm:$0xff]  ;;  %v91_v0 = vpack.c.bf16 %v37_v57, %v36_v56 }
   0xf   :  { %742 = vmatmul.mubr.msk.bf16.gmra.mrb[4].mxu1 %vm115_vm1, %v101_v29  ;;  %713 = vmatprep.mubr.msk.bf16.mxu0 %vm115_vm1, %v86_v30  ;;  %v39_v61 = vld [vmem:[%s1278_s0 + $0xa8] sm:$0xff]  ;;  %v70_v62 = vld [vmem:[%s1278_s0 + $0x1a0] sm:$0xff]  ;;  %v107_v1 = vpack.c.bf16 %v69_v59, %v68_v58  ;;  %v40_v4 = vld [vmem:[%s1278_s0 + $0xb0] sm:$0xff] }
  0x10   :  { %745 = vmatprep.mubr.msk.bf16.mxu1 %vm115_vm1, %v102_v31  ;;  %v71_v63 = vld [vmem:[%s1278_s0 + $0x1a8] sm:$0xff]  ;;  %v92_v2 = vpack.c.bf16 %v39_v61, %v38_v60  ;;  %v41_v5 = vld [vmem:[%s1278_s0 + $0xb8] sm:$0xff]  ;;  %v72_v6 = vld [vmem:[%s1278_s0 + $0x1b0] sm:$0xff] }
  0x11   :  { %v108_v3 = vpack.c.bf16 %v71_v63, %v70_v62  ;;  %v73_v7 = vld [vmem:[%s1278_s0 + $0x1b8] sm:$0xff]  ;;  %v42_v8 = vld [vmem:[%s1278_s0 + $0xc0] sm:$0xff]  ;;  %v43_v9 = vld [vmem:[%s1278_s0 + $0xc8] sm:$0xff]  ;;  %v93_v12 = vpack.c.bf16 %v41_v5, %v40_v4 }
  0x12   :  { %v74_v10 = vld [vmem:[%s1278_s0 + $0x1c0] sm:$0xff]  ;;  %v75_v11 = vld [vmem:[%s1278_s0 + $0x1c8] sm:$0xff]  ;;  %v109_v13 = vpack.c.bf16 %v73_v7, %v72_v6  ;;  %v94_v14 = vpack.c.bf16 %v43_v9, %v42_v8  ;;  %v44_v16 = vld [vmem:[%s1278_s0 + $0xd0] sm:$0xff] }
  0x13   :  { %v110_v15 = vpack.c.bf16 %v75_v11, %v74_v10  ;;  %v45_v17 = vld [vmem:[%s1278_s0 + $0xd8] sm:$0xff]  ;;  %v76_v18 = vld [vmem:[%s1278_s0 + $0x1d0] sm:$0xff]  ;;  %v46_v20 = vld [vmem:[%s1278_s0 + $0xe0] sm:$0xff] }
  0x14   :  { %v77_v19 = vld [vmem:[%s1278_s0 + $0x1d8] sm:$0xff]  ;;  %v47_v21 = vld [vmem:[%s1278_s0 + $0xe8] sm:$0xff]  ;;  %v78_v22 = vld [vmem:[%s1278_s0 + $0x1e0] sm:$0xff]  ;;  %v95_v24 = vpack.c.bf16 %v45_v17, %v44_v16 }
  0x15   :  { %v79_v23 = vld [vmem:[%s1278_s0 + $0x1e8] sm:$0xff]  ;;  %v111_v25 = vpack.c.bf16 %v77_v19, %v76_v18  ;;  %v96_v26 = vpack.c.bf16 %v47_v21, %v46_v20  ;;  %v48_v28 = vld [vmem:[%s1278_s0 + $0xf0] sm:$0xff]  ;;  %v49_v29 = vld [vmem:[%s1278_s0 + $0xf8] sm:$0xff] }
  0x16   :  { %714 = vmatmul.mubr.msk.bf16.gmra.mrb[8].mxu0 %vm115_vm1, %v87_v40  ;;  %v112_v27 = vpack.c.bf16 %v79_v23, %v78_v22  ;;  %v80_v30 = vld [vmem:[%s1278_s0 + $0x1f0] sm:$0xff]  ;;  %v81_v31 = vld [vmem:[%s1278_s0 + $0x1f8] sm:$0xff]  ;;  %v97_v32 = vpack.c.bf16 %v49_v29, %v48_v28 }
  0x17   :  { %746 = vmatmul.mubr.msk.bf16.gmra.mrb[8].mxu1 %vm115_vm1, %v103_v41  ;;  %717 = vmatprep.mubr.msk.bf16.mxu0 %vm115_vm1, %v88_v42  ;;  %v113_v33 = vpack.c.bf16 %v81_v31, %v80_v30 }
  0x18   :  { %749 = vmatprep.mubr.msk.bf16.mxu1 %vm115_vm1, %v104_v43 }
  0x1e   :  { %718 = vmatmul.mubr.msk.bf16.gmra.mrb[12].mxu0 %vm115_vm1, %v89_v52 }
  0x1f   :  { %750 = vmatmul.mubr.msk.bf16.gmra.mrb[12].mxu1 %vm115_vm1, %v105_v53  ;;  %721 = vmatprep.mubr.msk.bf16.mxu0 %vm115_vm1, %v90_v54 }
  0x20   :  { %753 = vmatprep.mubr.msk.bf16.mxu1 %vm115_vm1, %v106_v55 }
  0x26   :  { %722 = vmatmul.mubr.msk.bf16.gmra.mrb[16].mxu0 %vm115_vm1, %v91_v0 }
  0x27   :  { %754 = vmatmul.mubr.msk.bf16.gmra.mrb[16].mxu1 %vm115_vm1, %v107_v1  ;;  %725 = vmatprep.mubr.msk.bf16.mxu0 %vm115_vm1, %v92_v2 }
  0x28   :  { %757 = vmatprep.mubr.msk.bf16.mxu1 %vm115_vm1, %v108_v3 }
  0x2e   :  { %726 = vmatmul.mubr.msk.bf16.gmra.mrb[20].mxu0 %vm115_vm1, %v93_v12 }
  0x2f   :  { %758 = vmatmul.mubr.msk.bf16.gmra.mrb[20].mxu1 %vm115_vm1, %v109_v13  ;;  %729 = vmatprep.mubr.msk.bf16.mxu0 %vm115_vm1, %v94_v14 }
  0x30   :  { %761 = vmatprep.mubr.msk.bf16.mxu1 %vm115_vm1, %v110_v15 }
  0x36   :  { %730 = vmatmul.mubr.msk.bf16.gmra.mrb[24].mxu0 %vm115_vm1, %v95_v24 }
  0x37   :  { %762 = vmatmul.mubr.msk.bf16.gmra.mrb[24].mxu1 %vm115_vm1, %v111_v25  ;;  %733 = vmatprep.mubr.msk.bf16.mxu0 %vm115_vm1, %v96_v26 }
  0x38   :  { %765 = vmatprep.mubr.msk.bf16.mxu1 %vm115_vm1, %v112_v27 }
  0x3e   :  { %734 = vmatmul.mubr.msk.bf16.gmra.mrb[28].mxu0 %vm115_vm1, %v97_v32 }
  0x3f   :  { %766 = vmatmul.mubr.msk.bf16.gmra.mrb[28].mxu1 %vm115_vm1, %v113_v33 }
  0xd9   :  { %v707_v34 = vpop.f32.mrb[0].mxu0 }
  0xda   :  { %v739_v35 = vpop.f32.mrb[0].mxu1  ;;  %v507_v36 = vmax.f32 %v707_v34, 0.0  ;;  %v250_v38 = vpop.f32.mrb[1].mxu0 }
  0xdb   :  { %v539_v37 = vmax.f32 %v739_v35, 0.0  ;;  %v378_v39 = vpop.f32.mrb[1].mxu1  ;;  %v505_v40 = vmax.f32 %v250_v38, 0.0  ;;  %v708_v42 = vpop.f32.mrb[2].mxu0 }
  0xdc   :  { %v537_v41 = vmax.f32 %v378_v39, 0.0  ;;  %v740_v43 = vpop.f32.mrb[2].mxu1  ;;  %572 = vst.msk [vmem:[%s1279_s3 + $0x10] sm:$0xff] %vm569_vm2, %v507_v36  ;;  %v508_v44 = vmax.f32 %v708_v42, 0.0  ;;  %v253_v46 = vpop.f32.mrb[3].mxu0 }
  0xdd   :  { %604 = vst.msk [vmem:[%s1279_s3 + $0x110] sm:$0xff] %vm569_vm2, %v539_v37  ;;  %v540_v45 = vmax.f32 %v740_v43, 0.0  ;;  %v381_v47 = vpop.f32.mrb[3].mxu1  ;;  %570 = vst.msk [vmem:[%s1279_s3] sm:$0xff] %vm569_vm2, %v505_v40  ;;  %v506_v48 = vmax.f32 %v253_v46, 0.0 }
  0xde   :  { %602 = vst.msk [vmem:[%s1279_s3 + $0x100] sm:$0xff] %vm569_vm2, %v537_v41  ;;  %v538_v49 = vmax.f32 %v381_v47, 0.0  ;;  %573 = vst.msk [vmem:[%s1279_s3 + $0x18] sm:$0xff] %vm569_vm2, %v508_v44 }
  0xdf   :  { %605 = vst.msk [vmem:[%s1279_s3 + $0x118] sm:$0xff] %vm569_vm2, %v540_v45  ;;  %571 = vst.msk [vmem:[%s1279_s3 + $0x8] sm:$0xff] %vm569_vm2, %v506_v48 }
  0xe0   :  { %603 = vst.msk [vmem:[%s1279_s3 + $0x108] sm:$0xff] %vm569_vm2, %v538_v49 }
  0xe1   :  { %v711_v50 = vpop.f32.mrb[4].mxu0 }
  0xe2   :  { %v743_v51 = vpop.f32.mrb[4].mxu1  ;;  %v511_v52 = vmax.f32 %v711_v50, 0.0  ;;  %v266_v54 = vpop.f32.mrb[5].mxu0 }
  0xe3   :  { %v543_v53 = vmax.f32 %v743_v51, 0.0  ;;  %v394_v55 = vpop.f32.mrb[5].mxu1  ;;  %v509_v56 = vmax.f32 %v266_v54, 0.0  ;;  %v712_v58 = vpop.f32.mrb[6].mxu0 }
  0xe4   :  { %v541_v57 = vmax.f32 %v394_v55, 0.0  ;;  %v744_v59 = vpop.f32.mrb[6].mxu1  ;;  %576 = vst.msk [vmem:[%s1279_s3 + $0x30] sm:$0xff] %vm569_vm2, %v511_v52  ;;  %v512_v60 = vmax.f32 %v712_v58, 0.0  ;;  %v269_v62 = vpop.f32.mrb[7].mxu0 }
  0xe5   :  { %608 = vst.msk [vmem:[%s1279_s3 + $0x130] sm:$0xff] %vm569_vm2, %v543_v53  ;;  %v544_v61 = vmax.f32 %v744_v59, 0.0  ;;  %v397_v63 = vpop.f32.mrb[7].mxu1  ;;  %574 = vst.msk [vmem:[%s1279_s3 + $0x20] sm:$0xff] %vm569_vm2, %v509_v56  ;;  %v510_v0 = vmax.f32 %v269_v62, 0.0 }
  0xe6   :  { %606 = vst.msk [vmem:[%s1279_s3 + $0x120] sm:$0xff] %vm569_vm2, %v541_v57  ;;  %v542_v1 = vmax.f32 %v397_v63, 0.0  ;;  %577 = vst.msk [vmem:[%s1279_s3 + $0x38] sm:$0xff] %vm569_vm2, %v512_v60 }
  0xe7   :  { %609 = vst.msk [vmem:[%s1279_s3 + $0x138] sm:$0xff] %vm569_vm2, %v544_v61  ;;  %575 = vst.msk [vmem:[%s1279_s3 + $0x28] sm:$0xff] %vm569_vm2, %v510_v0 }
  0xe8   :  { %607 = vst.msk [vmem:[%s1279_s3 + $0x128] sm:$0xff] %vm569_vm2, %v542_v1 }
  0xe9   :  { %v715_v2 = vpop.f32.mrb[8].mxu0 }
  0xea   :  { %v747_v3 = vpop.f32.mrb[8].mxu1  ;;  %v515_v4 = vmax.f32 %v715_v2, 0.0  ;;  %v282_v6 = vpop.f32.mrb[9].mxu0 }
  0xeb   :  { %v547_v5 = vmax.f32 %v747_v3, 0.0  ;;  %v410_v7 = vpop.f32.mrb[9].mxu1  ;;  %v513_v8 = vmax.f32 %v282_v6, 0.0  ;;  %v716_v10 = vpop.f32.mrb[10].mxu0 }
  0xec   :  { %v545_v9 = vmax.f32 %v410_v7, 0.0  ;;  %v748_v11 = vpop.f32.mrb[10].mxu1  ;;  %580 = vst.msk [vmem:[%s1279_s3 + $0x50] sm:$0xff] %vm569_vm2, %v515_v4  ;;  %v516_v12 = vmax.f32 %v716_v10, 0.0  ;;  %v285_v14 = vpop.f32.mrb[11].mxu0 }
  0xed   :  { %612 = vst.msk [vmem:[%s1279_s3 + $0x150] sm:$0xff] %vm569_vm2, %v547_v5  ;;  %v548_v13 = vmax.f32 %v748_v11, 0.0  ;;  %v413_v15 = vpop.f32.mrb[11].mxu1  ;;  %578 = vst.msk [vmem:[%s1279_s3 + $0x40] sm:$0xff] %vm569_vm2, %v513_v8  ;;  %v514_v16 = vmax.f32 %v285_v14, 0.0 }
  0xee   :  { %610 = vst.msk [vmem:[%s1279_s3 + $0x140] sm:$0xff] %vm569_vm2, %v545_v9  ;;  %v546_v17 = vmax.f32 %v413_v15, 0.0  ;;  %581 = vst.msk [vmem:[%s1279_s3 + $0x58] sm:$0xff] %vm569_vm2, %v516_v12 }
  0xef   :  { %613 = vst.msk [vmem:[%s1279_s3 + $0x158] sm:$0xff] %vm569_vm2, %v548_v13  ;;  %579 = vst.msk [vmem:[%s1279_s3 + $0x48] sm:$0xff] %vm569_vm2, %v514_v16 }
  0xf0   :  { %611 = vst.msk [vmem:[%s1279_s3 + $0x148] sm:$0xff] %vm569_vm2, %v546_v17 }
  0xf1   :  { %v719_v18 = vpop.f32.mrb[12].mxu0 }
  0xf2   :  { %v751_v19 = vpop.f32.mrb[12].mxu1  ;;  %v519_v20 = vmax.f32 %v719_v18, 0.0  ;;  %v298_v22 = vpop.f32.mrb[13].mxu0 }
  0xf3   :  { %v551_v21 = vmax.f32 %v751_v19, 0.0  ;;  %v426_v23 = vpop.f32.mrb[13].mxu1  ;;  %v517_v24 = vmax.f32 %v298_v22, 0.0  ;;  %v720_v26 = vpop.f32.mrb[14].mxu0 }
  0xf4   :  { %v549_v25 = vmax.f32 %v426_v23, 0.0  ;;  %v752_v27 = vpop.f32.mrb[14].mxu1  ;;  %584 = vst.msk [vmem:[%s1279_s3 + $0x70] sm:$0xff] %vm569_vm2, %v519_v20  ;;  %v520_v28 = vmax.f32 %v720_v26, 0.0  ;;  %v301_v30 = vpop.f32.mrb[15].mxu0 }
  0xf5   :  { %616 = vst.msk [vmem:[%s1279_s3 + $0x170] sm:$0xff] %vm569_vm2, %v551_v21  ;;  %v552_v29 = vmax.f32 %v752_v27, 0.0  ;;  %v429_v31 = vpop.f32.mrb[15].mxu1  ;;  %582 = vst.msk [vmem:[%s1279_s3 + $0x60] sm:$0xff] %vm569_vm2, %v517_v24  ;;  %v518_v32 = vmax.f32 %v301_v30, 0.0 }
  0xf6   :  { %614 = vst.msk [vmem:[%s1279_s3 + $0x160] sm:$0xff] %vm569_vm2, %v549_v25  ;;  %v550_v33 = vmax.f32 %v429_v31, 0.0  ;;  %585 = vst.msk [vmem:[%s1279_s3 + $0x78] sm:$0xff] %vm569_vm2, %v520_v28 }
  0xf7   :  { %617 = vst.msk [vmem:[%s1279_s3 + $0x178] sm:$0xff] %vm569_vm2, %v552_v29  ;;  %583 = vst.msk [vmem:[%s1279_s3 + $0x68] sm:$0xff] %vm569_vm2, %v518_v32 }
  0xf8   :  { %615 = vst.msk [vmem:[%s1279_s3 + $0x168] sm:$0xff] %vm569_vm2, %v550_v33 }
  0xf9   :  { %v723_v34 = vpop.f32.mrb[16].mxu0 }
  0xfa   :  { %v755_v35 = vpop.f32.mrb[16].mxu1  ;;  %v523_v36 = vmax.f32 %v723_v34, 0.0  ;;  %v314_v38 = vpop.f32.mrb[17].mxu0 }
  0xfb   :  { %v555_v37 = vmax.f32 %v755_v35, 0.0  ;;  %v442_v39 = vpop.f32.mrb[17].mxu1  ;;  %v521_v40 = vmax.f32 %v314_v38, 0.0  ;;  %v724_v42 = vpop.f32.mrb[18].mxu0 }
  0xfc   :  { %v553_v41 = vmax.f32 %v442_v39, 0.0  ;;  %v756_v43 = vpop.f32.mrb[18].mxu1  ;;  %588 = vst.msk [vmem:[%s1279_s3 + $0x90] sm:$0xff] %vm569_vm2, %v523_v36  ;;  %v524_v44 = vmax.f32 %v724_v42, 0.0  ;;  %v317_v46 = vpop.f32.mrb[19].mxu0 }
  0xfd   :  { %620 = vst.msk [vmem:[%s1279_s3 + $0x190] sm:$0xff] %vm569_vm2, %v555_v37  ;;  %v556_v45 = vmax.f32 %v756_v43, 0.0  ;;  %v445_v47 = vpop.f32.mrb[19].mxu1  ;;  %586 = vst.msk [vmem:[%s1279_s3 + $0x80] sm:$0xff] %vm569_vm2, %v521_v40  ;;  %v522_v48 = vmax.f32 %v317_v46, 0.0 }
  0xfe   :  { %618 = vst.msk [vmem:[%s1279_s3 + $0x180] sm:$0xff] %vm569_vm2, %v553_v41  ;;  %v554_v49 = vmax.f32 %v445_v47, 0.0  ;;  %589 = vst.msk [vmem:[%s1279_s3 + $0x98] sm:$0xff] %vm569_vm2, %v524_v44 }
  0xff   :  { %621 = vst.msk [vmem:[%s1279_s3 + $0x198] sm:$0xff] %vm569_vm2, %v556_v45  ;;  %587 = vst.msk [vmem:[%s1279_s3 + $0x88] sm:$0xff] %vm569_vm2, %v522_v48 }
 0x100   :  { %619 = vst.msk [vmem:[%s1279_s3 + $0x188] sm:$0xff] %vm569_vm2, %v554_v49 }
 0x101   :  { %v727_v50 = vpop.f32.mrb[20].mxu0 }
 0x102   :  { %v759_v51 = vpop.f32.mrb[20].mxu1  ;;  %v527_v52 = vmax.f32 %v727_v50, 0.0  ;;  %v330_v54 = vpop.f32.mrb[21].mxu0 }
 0x103   :  { %v559_v53 = vmax.f32 %v759_v51, 0.0  ;;  %v458_v55 = vpop.f32.mrb[21].mxu1  ;;  %v525_v56 = vmax.f32 %v330_v54, 0.0  ;;  %v728_v58 = vpop.f32.mrb[22].mxu0 }
 0x104   :  { %v557_v57 = vmax.f32 %v458_v55, 0.0  ;;  %v760_v59 = vpop.f32.mrb[22].mxu1  ;;  %592 = vst.msk [vmem:[%s1279_s3 + $0xb0] sm:$0xff] %vm569_vm2, %v527_v52  ;;  %v528_v60 = vmax.f32 %v728_v58, 0.0  ;;  %v333_v62 = vpop.f32.mrb[23].mxu0 }
 0x105   :  { %624 = vst.msk [vmem:[%s1279_s3 + $0x1b0] sm:$0xff] %vm569_vm2, %v559_v53  ;;  %v560_v61 = vmax.f32 %v760_v59, 0.0  ;;  %v461_v63 = vpop.f32.mrb[23].mxu1  ;;  %590 = vst.msk [vmem:[%s1279_s3 + $0xa0] sm:$0xff] %vm569_vm2, %v525_v56  ;;  %v526_v0 = vmax.f32 %v333_v62, 0.0 }
 0x106   :  { %622 = vst.msk [vmem:[%s1279_s3 + $0x1a0] sm:$0xff] %vm569_vm2, %v557_v57  ;;  %v558_v1 = vmax.f32 %v461_v63, 0.0  ;;  %593 = vst.msk [vmem:[%s1279_s3 + $0xb8] sm:$0xff] %vm569_vm2, %v528_v60 }
 0x107   :  { %625 = vst.msk [vmem:[%s1279_s3 + $0x1b8] sm:$0xff] %vm569_vm2, %v560_v61  ;;  %591 = vst.msk [vmem:[%s1279_s3 + $0xa8] sm:$0xff] %vm569_vm2, %v526_v0 }
 0x108   :  { %623 = vst.msk [vmem:[%s1279_s3 + $0x1a8] sm:$0xff] %vm569_vm2, %v558_v1 }
 0x109   :  { %v731_v2 = vpop.f32.mrb[24].mxu0 }
 0x10a   :  { %v763_v3 = vpop.f32.mrb[24].mxu1  ;;  %v531_v4 = vmax.f32 %v731_v2, 0.0  ;;  %v346_v6 = vpop.f32.mrb[25].mxu0 }
 0x10b   :  { %v563_v5 = vmax.f32 %v763_v3, 0.0  ;;  %v474_v7 = vpop.f32.mrb[25].mxu1  ;;  %v529_v8 = vmax.f32 %v346_v6, 0.0  ;;  %v732_v10 = vpop.f32.mrb[26].mxu0 }
 0x10c   :  { %v561_v9 = vmax.f32 %v474_v7, 0.0  ;;  %v764_v11 = vpop.f32.mrb[26].mxu1  ;;  %596 = vst.msk [vmem:[%s1279_s3 + $0xd0] sm:$0xff] %vm569_vm2, %v531_v4  ;;  %v532_v12 = vmax.f32 %v732_v10, 0.0  ;;  %v349_v14 = vpop.f32.mrb[27].mxu0 }
 0x10d   :  { %628 = vst.msk [vmem:[%s1279_s3 + $0x1d0] sm:$0xff] %vm569_vm2, %v563_v5  ;;  %v564_v13 = vmax.f32 %v764_v11, 0.0  ;;  %v477_v15 = vpop.f32.mrb[27].mxu1  ;;  %594 = vst.msk [vmem:[%s1279_s3 + $0xc0] sm:$0xff] %vm569_vm2, %v529_v8  ;;  %v530_v16 = vmax.f32 %v349_v14, 0.0 }
 0x10e   :  { %626 = vst.msk [vmem:[%s1279_s3 + $0x1c0] sm:$0xff] %vm569_vm2, %v561_v9  ;;  %v562_v17 = vmax.f32 %v477_v15, 0.0  ;;  %597 = vst.msk [vmem:[%s1279_s3 + $0xd8] sm:$0xff] %vm569_vm2, %v532_v12 }
 0x10f   :  { %629 = vst.msk [vmem:[%s1279_s3 + $0x1d8] sm:$0xff] %vm569_vm2, %v564_v13  ;;  %595 = vst.msk [vmem:[%s1279_s3 + $0xc8] sm:$0xff] %vm569_vm2, %v530_v16 }
 0x110   :  { %627 = vst.msk [vmem:[%s1279_s3 + $0x1c8] sm:$0xff] %vm569_vm2, %v562_v17 }
 0x111   :  { %v735_v18 = vpop.f32.mrb[28].mxu0 }
 0x112   :  { %v767_v19 = vpop.f32.mrb[28].mxu1  ;;  %v535_v20 = vmax.f32 %v735_v18, 0.0  ;;  %v362_v22 = vpop.f32.mrb[29].mxu0 }
 0x113   :  { %v567_v21 = vmax.f32 %v767_v19, 0.0  ;;  %v490_v23 = vpop.f32.mrb[29].mxu1  ;;  %v533_v24 = vmax.f32 %v362_v22, 0.0  ;;  %v736_v26 = vpop.f32.mrb[30].mxu0 }
 0x114   :  { %v565_v25 = vmax.f32 %v490_v23, 0.0  ;;  %v768_v27 = vpop.f32.mrb[30].mxu1  ;;  %600 = vst.msk [vmem:[%s1279_s3 + $0xf0] sm:$0xff] %vm569_vm2, %v535_v20  ;;  %v536_v28 = vmax.f32 %v736_v26, 0.0  ;;  %v365_v30 = vpop.f32.mrb[31].mxu0 }
 0x115   :  { %632 = vst.msk [vmem:[%s1279_s3 + $0x1f0] sm:$0xff] %vm569_vm2, %v567_v21  ;;  %v568_v29 = vmax.f32 %v768_v27, 0.0  ;;  %v493_v31 = vpop.f32.mrb[31].mxu1  ;;  %598 = vst.msk [vmem:[%s1279_s3 + $0xe0] sm:$0xff] %vm569_vm2, %v533_v24  ;;  %v534_v32 = vmax.f32 %v365_v30, 0.0 }
 0x116   :  { %630 = vst.msk [vmem:[%s1279_s3 + $0x1e0] sm:$0xff] %vm569_vm2, %v565_v25  ;;  %v566_v33 = vmax.f32 %v493_v31, 0.0  ;;  %601 = vst.msk [vmem:[%s1279_s3 + $0xf8] sm:$0xff] %vm569_vm2, %v536_v28 }
 0x117   :  { %633 = vst.msk [vmem:[%s1279_s3 + $0x1f8] sm:$0xff] %vm569_vm2, %v568_v29  ;;  %599 = vst.msk [vmem:[%s1279_s3 + $0xe8] sm:$0xff] %vm569_vm2, %v534_v32 }
 0x118   :  { %631 = vst.msk [vmem:[%s1279_s3 + $0x1e8] sm:$0xff] %vm569_vm2, %v566_v33 }

</bundles_post_ra>
